<compile_context>
chip_gen: v6e
topology: v6e:2x2x1
jax: 0.10.0
libtpu: 0.0.40
codegen_flags: <defaults>
</compile_context>

<pallas_src>
import math
import functools

import jax
import jax.numpy as jnp
from jax import lax
from jax.experimental import pallas as pl
from jax.experimental.pallas import tpu as pltpu


def _round_up(x, m):
    return ((x + m - 1) // m) * m


def _choose_tile(n, candidates=(512, 256, 128, 64, 32, 16, 8)):
    for c in candidates:
        if c <= n and n % c == 0:
            return c
    return n


def mha_kernel(q_ref, k_ref, v_ref,
               wq_ref, wk_ref, wv_ref, wo_ref,
               bq_ref, bk_ref, bv_ref, bo_ref,
               o_ref,
               kp_ref, vp_ref, ctx_ref,
               *, num_heads, hd_pad, scale):
    mm_t = q_ref.dtype  # MXU operand dtype: keep the input dtype (bf16 stays bf16)

    # --- K/V projections: computed once per batch element (first query tile) and
    # cached in VMEM scratch; reused for all remaining query tiles of this batch. ---
    @pl.when(pl.program_id(1) == 0)
    def _project_kv():
        kp = jnp.dot(k_ref[...], wk_ref[...],
                     preferred_element_type=jnp.float32) + bk_ref[...]
        vp = jnp.dot(v_ref[...], wv_ref[...],
                     preferred_element_type=jnp.float32) + bv_ref[...]
        kp_ref[...] = kp.astype(kp_ref.dtype)
        vp_ref[...] = vp.astype(vp_ref.dtype)

    # --- Q projection for this (batch, T-tile); 1/sqrt(head_dim) folded in here
    # (cheaper on (tq, E_pad) than on the (tq, S) score matrices). ---
    qp = jnp.dot(q_ref[...], wq_ref[...],
                 preferred_element_type=jnp.float32) + bq_ref[...]
    qp = (qp * scale).astype(mm_t)

    # --- Per-head attention. Head slabs are hd_pad wide (multiple of 128) at
    # 128-aligned column offsets -> every slice is lane-aligned, and each head's
    # context is written directly into the ctx scratch slab (no concat). ---
    for h in range(num_heads):
        sl = slice(h * hd_pad, (h + 1) * hd_pad)
        qh = qp[:, sl]        # (tq, hd_pad)
        kh = kp_ref[:, sl]    # (S,  hd_pad)
        vh = vp_ref[:, sl]    # (S,  hd_pad)

        # scores = qh @ kh^T without materializing a transpose of kh.
        s = lax.dot_general(qh, kh, (((1,), (1,)), ((), ())),
                            preferred_element_type=jnp.float32)        # (tq, S)
        m = jnp.max(s, axis=-1, keepdims=True)
        p = jnp.exp(s - m)
        denom = jnp.sum(p, axis=-1, keepdims=True)

        # Unnormalized context, then deferred normalization: EUP reciprocal + one
        # Newton step, applied as a (tq, hd_pad) multiply instead of a (tq, S) divide.
        ctx = jnp.dot(p.astype(mm_t), vh, preferred_element_type=jnp.float32)
        inv = pl.reciprocal(denom, approx=True)
        inv = inv * (2.0 - denom * inv)      # Newton refinement -> ~f32-exact
        ctx_ref[:, sl] = ctx * inv

    # --- Output projection over the full (tq, E_pad) context slab. Padded rows of
    # wo are zero, so padded context columns contribute nothing. ---
    out = jnp.dot(ctx_ref[...].astype(wo_ref.dtype), wo_ref[...],
                  preferred_element_type=jnp.float32) + bo_ref[...]
    o_ref[...] = out.astype(o_ref.dtype)


def multihead_attention_pallas(query, key, value, params, num_heads, tq=None):
    B, T, E = query.shape
    _, S, _ = key.shape
    hd = E // num_heads
    assert hd * num_heads == E, "embed_dim must be divisible by num_heads"

    # Pad head_dim up to a multiple of 128 so each head's slab is lane-aligned.
    hd_pad = _round_up(hd, 128)
    E_pad = num_heads * hd_pad

    in_w = params["in_proj_weight"]   # (3E, E)
    in_b = params["in_proj_bias"]     # (3E,)
    w_q, w_k, w_v = in_w[:E], in_w[E:2 * E], in_w[2 * E:]
    b_q, b_k, b_v = in_b[:E], in_b[E:2 * E], in_b[2 * E:]
    w_o = params["out_proj_weight"]   # (E, E)
    b_o = params["out_proj_bias"]     # (E,)

    def pad_in_proj(w, b):
        # F.linear: y = x @ w.T + b ; arrange output columns head-major and pad each
        # head's hd columns out to hd_pad with zeros.
        wt = w.T.reshape(E, num_heads, hd)
        wt = jnp.pad(wt, ((0, 0), (0, 0), (0, hd_pad - hd))).reshape(E, E_pad)
        bb = jnp.pad(b.reshape(num_heads, hd),
                     ((0, 0), (0, hd_pad - hd))).reshape(1, E_pad)
        return wt, bb

    wq_p, bq_p = pad_in_proj(w_q, b_q)
    wk_p, bk_p = pad_in_proj(w_k, b_k)
    wv_p, bv_p = pad_in_proj(w_v, b_v)

    # Output projection: rows grouped per head, padded rows are zero.
    wo_p = jnp.pad(w_o.T.reshape(num_heads, hd, E),
                   ((0, 0), (0, hd_pad - hd), (0, 0))).reshape(E_pad, E)
    bo_p = b_o.reshape(1, E)

    if tq is None:
        tq = _choose_tile(T)
    assert T % tq == 0, "query tile must divide T"
    n_t = T // tq
    mm_dtype = query.dtype

    kernel = functools.partial(mha_kernel, num_heads=num_heads, hd_pad=hd_pad,
                               scale=1.0 / math.sqrt(hd))

    const = lambda b, t: (0, 0)
    in_specs = [
        pl.BlockSpec((pl.Squeezed(), tq, E), lambda b, t: (b, t, 0)),  # query tile
        pl.BlockSpec((pl.Squeezed(), S, E), lambda b, t: (b, 0, 0)),   # key (full S)
        pl.BlockSpec((pl.Squeezed(), S, E), lambda b, t: (b, 0, 0)),   # value (full S)
        pl.BlockSpec((E, E_pad), const),    # wq (transposed, head-padded)
        pl.BlockSpec((E, E_pad), const),    # wk
        pl.BlockSpec((E, E_pad), const),    # wv
        pl.BlockSpec((E_pad, E), const),    # wo
        pl.BlockSpec((1, E_pad), const),    # bq
        pl.BlockSpec((1, E_pad), const),    # bk
        pl.BlockSpec((1, E_pad), const),    # bv
        pl.BlockSpec((1, E), const),        # bo
    ]

    return pl.pallas_call(
        kernel,
        out_shape=jax.ShapeDtypeStruct((B, T, E), query.dtype),
        grid=(B, n_t),
        in_specs=in_specs,
        out_specs=pl.BlockSpec((pl.Squeezed(), tq, E), lambda b, t: (b, t, 0)),
        scratch_shapes=[
            pltpu.VMEM((S, E_pad), mm_dtype),      # cached K projection
            pltpu.VMEM((S, E_pad), mm_dtype),      # cached V projection
            pltpu.VMEM((tq, E_pad), jnp.float32),  # per-tile context slab
        ],
        # Batch axis is parallel (megacore-shardable). The T-tile axis carries the
        # cached K/V projections in scratch, so it must remain "arbitrary".
        compiler_params=pltpu.CompilerParams(
            dimension_semantics=("parallel", "arbitrary")),
    )(query, key, value, wq_p, wk_p, wv_p, wo_p, bq_p, bk_p, bv_p, bo_p)


def multihead_attention_reference(query, key, value, params, num_heads):
    # Pure-JAX reference mirroring the PyTorch forward (no masks, eval mode).
    B, T, E = query.shape
    S = key.shape[1]
    hd = E // num_heads
    in_w = params["in_proj_weight"]
    in_b = params["in_proj_bias"]
    w_q, w_k, w_v = in_w[:E], in_w[E:2 * E], in_w[2 * E:]
    b_q, b_k, b_v = in_b[:E], in_b[E:2 * E], in_b[2 * E:]
    w_o, b_o = params["out_proj_weight"], params["out_proj_bias"]

    qp = query @ w_q.T + b_q
    kp = key @ w_k.T + b_k
    vp = value @ w_v.T + b_v

    def split(x, L):
        return x.reshape(B, L, num_heads, hd).transpose(0, 2, 1, 3)

    qh, kh, vh = split(qp, T), split(kp, S), split(vp, S)
    scores = jnp.einsum("bhtd,bhsd->bhts", qh, kh) / math.sqrt(hd)
    p = jax.nn.softmax(scores, axis=-1)
    ctx = jnp.einsum("bhts,bhsd->bhtd", p, vh).transpose(0, 2, 1, 3).reshape(B, T, E)
    return ctx @ w_o.T + b_o


def init_params(rng, embed_dim):
    k1, k2 = jax.random.split(rng, 2)
    # xavier_uniform_ on (3E, E): bound = sqrt(6 / (E + 3E))
    bound_in = math.sqrt(6.0 / (embed_dim + 3 * embed_dim))
    in_proj_weight = jax.random.uniform(
        k1, (3 * embed_dim, embed_dim), jnp.float32, -bound_in, bound_in)
    in_proj_bias = jnp.zeros((3 * embed_dim,), jnp.float32)
    bound_out = 1.0 / math.sqrt(embed_dim)
    out_proj_weight = jax.random.uniform(
        k2, (embed_dim, embed_dim), jnp.float32, -bound_out, bound_out)
    out_proj_bias = jnp.zeros((embed_dim,), jnp.float32)
    return {
        "in_proj_weight": in_proj_weight,
        "in_proj_bias": in_proj_bias,
        "out_proj_weight": out_proj_weight,
        "out_proj_bias": out_proj_bias,
    }


if __name__ == "__main__":
    # Small cross-attention shapes; tq=8 forces two query tiles per batch element so
    # the K/V-projection caching path (pl.when on the T-tile axis) is exercised.
    B, T, S, E, H = 2, 16, 8, 32, 4

    root = jax.random.PRNGKey(0)
    kparam, kq, kk, kv = jax.random.split(root, 4)
    params = init_params(kparam, E)

    query = jax.random.normal(kq, (B, T, E), jnp.float32)
    key = jax.random.normal(kk, (B, S, E), jnp.float32)
    value = jax.random.normal(kv, (B, S, E), jnp.float32)

    out = multihead_attention_pallas(query, key, value, params, H, tq=8)
    out = jax.block_until_ready(out)

    ref = multihead_attention_reference(query, key, value, params, H)
    assert out.shape == (B, T, E)
    assert jnp.allclose(out, ref, atol=2e-3, rtol=2e-3), "Pallas output mismatch vs reference"

    print("KERNEL_OK")
</pallas_src>

<mosaic_0001>
module attributes {stable_mosaic.version = 11 : i64} {
  func.func @mha_kernel(%arg0: i32, %arg1: i32, %arg2: memref<1x8x32xf32, #tpu.memory_space<vmem>>, %arg3: memref<1x8x32xf32, #tpu.memory_space<vmem>>, %arg4: memref<1x8x32xf32, #tpu.memory_space<vmem>>, %arg5: memref<32x512xf32, #tpu.memory_space<vmem>>, %arg6: memref<32x512xf32, #tpu.memory_space<vmem>>, %arg7: memref<32x512xf32, #tpu.memory_space<vmem>>, %arg8: memref<512x32xf32, #tpu.memory_space<vmem>>, %arg9: memref<1x512xf32, #tpu.memory_space<vmem>>, %arg10: memref<1x512xf32, #tpu.memory_space<vmem>>, %arg11: memref<1x512xf32, #tpu.memory_space<vmem>>, %arg12: memref<1x32xf32, #tpu.memory_space<vmem>>, %arg13: memref<1x8x32xf32, #tpu.memory_space<vmem>>, %arg14: memref<8x512xf32, #tpu.memory_space<vmem>>, %arg15: memref<8x512xf32, #tpu.memory_space<vmem>>, %arg16: memref<8x512xf32, #tpu.memory_space<vmem>>) attributes {dimension_semantics = [#tpu.dimension_semantics<parallel>, #tpu.dimension_semantics<arbitrary>], iteration_bounds = array<i64: 2, 2>, scalar_prefetch = 0 : i64, scratch_operands = 3 : i64, tpu.core_type = #tpu.core_type<tc>, window_params = [{transform_indices = @transform_0, window_bounds = array<i64: 1, 8, 32>}, {transform_indices = @transform_1, window_bounds = array<i64: 1, 8, 32>}, {transform_indices = @transform_2, window_bounds = array<i64: 1, 8, 32>}, {pipeline_mode = #tpu.pipeline_mode<synchronous>, transform_indices = @transform_3, window_bounds = array<i64: 32, 512>}, {pipeline_mode = #tpu.pipeline_mode<synchronous>, transform_indices = @transform_4, window_bounds = array<i64: 32, 512>}, {pipeline_mode = #tpu.pipeline_mode<synchronous>, transform_indices = @transform_5, window_bounds = array<i64: 32, 512>}, {pipeline_mode = #tpu.pipeline_mode<synchronous>, transform_indices = @transform_6, window_bounds = array<i64: 512, 32>}, {pipeline_mode = #tpu.pipeline_mode<synchronous>, transform_indices = @transform_7, window_bounds = array<i64: 1, 512>}, {pipeline_mode = #tpu.pipeline_mode<synchronous>, transform_indices = @transform_8, window_bounds = array<i64: 1, 512>}, {pipeline_mode = #tpu.pipeline_mode<synchronous>, transform_indices = @transform_9, window_bounds = array<i64: 1, 512>}, {pipeline_mode = #tpu.pipeline_mode<synchronous>, transform_indices = @transform_10, window_bounds = array<i64: 1, 32>}, {transform_indices = @transform_11, window_bounds = array<i64: 1, 8, 32>}]} {
    %c0_i32 = arith.constant 0 : i32
    %0 = arith.cmpi eq, %arg1, %c0_i32 : i32
    %1 = arith.extui %0 : i1 to i32
    %c0_i32_0 = arith.constant 0 : i32
    %2 = arith.cmpi ne, %1, %c0_i32_0 : i32
    scf.if %2 {
      %c0_59 = arith.constant 0 : index
      %c0_60 = arith.constant 0 : index
      %c0_61 = arith.constant 0 : index
      %101 = vector.load %arg3[%c0_59, %c0_60, %c0_61] : memref<1x8x32xf32, #tpu.memory_space<vmem>>, vector<1x8x32xf32>
      %102 = vector.shape_cast %101 : vector<1x8x32xf32> to vector<8x32xf32>
      %c0_62 = arith.constant 0 : index
      %c0_63 = arith.constant 0 : index
      %103 = vector.load %arg6[%c0_62, %c0_63] : memref<32x512xf32, #tpu.memory_space<vmem>>, vector<32x512xf32>
      %cst_64 = arith.constant dense<0.000000e+00> : vector<8x512xf32>
      %104 = tpu.matmul %102, %103, %cst_64 {dimension_numbers = #tpu.dot_dimension_numbers<[1], [0], [0], [1], [0, 0, 1, 1], [], []>} : vector<8x32xf32>, vector<32x512xf32>, vector<8x512xf32> -> vector<8x512xf32>
      %c0_65 = arith.constant 0 : index
      %c0_66 = arith.constant 0 : index
      %105 = vector.load %arg10[%c0_65, %c0_66] : memref<1x512xf32, #tpu.memory_space<vmem>>, vector<1x512xf32>
      %106 = vector.broadcast %105 : vector<1x512xf32> to vector<8x512xf32>
      %107 = arith.addf %104, %106 : vector<8x512xf32>
      %c0_67 = arith.constant 0 : index
      %c0_68 = arith.constant 0 : index
      %c0_69 = arith.constant 0 : index
      %108 = vector.load %arg4[%c0_67, %c0_68, %c0_69] : memref<1x8x32xf32, #tpu.memory_space<vmem>>, vector<1x8x32xf32>
      %109 = vector.shape_cast %108 : vector<1x8x32xf32> to vector<8x32xf32>
      %c0_70 = arith.constant 0 : index
      %c0_71 = arith.constant 0 : index
      %110 = vector.load %arg7[%c0_70, %c0_71] : memref<32x512xf32, #tpu.memory_space<vmem>>, vector<32x512xf32>
      %cst_72 = arith.constant dense<0.000000e+00> : vector<8x512xf32>
      %111 = tpu.matmul %109, %110, %cst_72 {dimension_numbers = #tpu.dot_dimension_numbers<[1], [0], [0], [1], [0, 0, 1, 1], [], []>} : vector<8x32xf32>, vector<32x512xf32>, vector<8x512xf32> -> vector<8x512xf32>
      %c0_73 = arith.constant 0 : index
      %c0_74 = arith.constant 0 : index
      %112 = vector.load %arg11[%c0_73, %c0_74] : memref<1x512xf32, #tpu.memory_space<vmem>>, vector<1x512xf32>
      %113 = vector.broadcast %112 : vector<1x512xf32> to vector<8x512xf32>
      %114 = arith.addf %111, %113 : vector<8x512xf32>
      %c0_75 = arith.constant 0 : index
      %c0_76 = arith.constant 0 : index
      %115 = vector.load %arg14[%c0_75, %c0_76] : memref<8x512xf32, #tpu.memory_space<vmem>>, vector<8x512xf32>
      tpu.vector_store %arg14[%c0_75, %c0_76], %107 {strides = array<i32>} : memref<8x512xf32, #tpu.memory_space<vmem>>, vector<8x512xf32>,
      %c0_77 = arith.constant 0 : index
      %c0_78 = arith.constant 0 : index
      %116 = vector.load %arg15[%c0_77, %c0_78] : memref<8x512xf32, #tpu.memory_space<vmem>>, vector<8x512xf32>
      tpu.vector_store %arg15[%c0_77, %c0_78], %114 {strides = array<i32>} : memref<8x512xf32, #tpu.memory_space<vmem>>, vector<8x512xf32>,
    } else {
    }
    %c0 = arith.constant 0 : index
    %c0_1 = arith.constant 0 : index
    %c0_2 = arith.constant 0 : index
    %3 = vector.load %arg2[%c0, %c0_1, %c0_2] : memref<1x8x32xf32, #tpu.memory_space<vmem>>, vector<1x8x32xf32>
    %4 = vector.shape_cast %3 : vector<1x8x32xf32> to vector<8x32xf32>
    %c0_3 = arith.constant 0 : index
    %c0_4 = arith.constant 0 : index
    %5 = vector.load %arg5[%c0_3, %c0_4] : memref<32x512xf32, #tpu.memory_space<vmem>>, vector<32x512xf32>
    %cst = arith.constant dense<0.000000e+00> : vector<8x512xf32>
    %6 = tpu.matmul %4, %5, %cst {dimension_numbers = #tpu.dot_dimension_numbers<[1], [0], [0], [1], [0, 0, 1, 1], [], []>} : vector<8x32xf32>, vector<32x512xf32>, vector<8x512xf32> -> vector<8x512xf32>
    %c0_5 = arith.constant 0 : index
    %c0_6 = arith.constant 0 : index
    %7 = vector.load %arg9[%c0_5, %c0_6] : memref<1x512xf32, #tpu.memory_space<vmem>>, vector<1x512xf32>
    %8 = vector.broadcast %7 : vector<1x512xf32> to vector<8x512xf32>
    %9 = arith.addf %6, %8 : vector<8x512xf32>
    %cst_7 = arith.constant 0.353553385 : f32
    %10 = vector.broadcast %cst_7 : f32 to vector<8x512xf32>
    %11 = arith.mulf %9, %10 : vector<8x512xf32>
    %12 = vector.extract_strided_slice %11 {offsets = [0, 0], sizes = [8, 128], strides = [1, 1]} : vector<8x512xf32> to vector<8x128xf32>
    %c0_8 = arith.constant 0 : index
    %c0_9 = arith.constant 0 : index
    %13 = vector.load %arg14[%c0_8, %c0_9] : memref<8x512xf32, #tpu.memory_space<vmem>>, vector<8x128xf32>
    %c0_10 = arith.constant 0 : index
    %c0_11 = arith.constant 0 : index
    %14 = vector.load %arg15[%c0_10, %c0_11] : memref<8x512xf32, #tpu.memory_space<vmem>>, vector<8x128xf32>
    %cst_12 = arith.constant dense<0.000000e+00> : vector<8x8xf32>
    %15 = tpu.matmul %12, %13, %cst_12 {dimension_numbers = #tpu.dot_dimension_numbers<[1], [1], [0], [0], [0, 0, 1, 0], [], []>} : vector<8x128xf32>, vector<8x128xf32>, vector<8x8xf32> -> vector<8x8xf32>
    %cst_13 = arith.constant dense<0xFF800000> : vector<8xf32>
    %16 = vector.multi_reduction <maximumf>, %15, %cst_13 [1] : vector<8x8xf32> to vector<8xf32>
    %17 = vector.shape_cast %16 : vector<8xf32> to vector<8x1xf32>
    %18 = vector.broadcast %17 : vector<8x1xf32> to vector<8x8xf32>
    %19 = arith.subf %15, %18 : vector<8x8xf32>
    %20 = math.exp %19 : vector<8x8xf32>
    %cst_14 = arith.constant dense<0.000000e+00> : vector<8xf32>
    %21 = vector.multi_reduction <add>, %20, %cst_14 [1] : vector<8x8xf32> to vector<8xf32>
    %22 = vector.shape_cast %21 : vector<8xf32> to vector<8x1xf32>
    %cst_15 = arith.constant dense<0.000000e+00> : vector<8x128xf32>
    %23 = tpu.matmul %20, %14, %cst_15 {dimension_numbers = #tpu.dot_dimension_numbers<[1], [0], [0], [1], [0, 0, 1, 1], [], []>} : vector<8x8xf32>, vector<8x128xf32>, vector<8x128xf32> -> vector<8x128xf32>
    %24 = tpu.reciprocal %22 {approx = true} : vector<8x1xf32> -> vector<8x1xf32>
    %25 = arith.mulf %22, %24 : vector<8x1xf32>
    %cst_16 = arith.constant 2.000000e+00 : f32
    %26 = vector.broadcast %cst_16 : f32 to vector<8x1xf32>
    %27 = arith.subf %26, %25 : vector<8x1xf32>
    %28 = arith.mulf %24, %27 : vector<8x1xf32>
    %29 = vector.broadcast %28 : vector<8x1xf32> to vector<8x128xf32>
    %30 = arith.mulf %23, %29 : vector<8x128xf32>
    %c0_17 = arith.constant 0 : index
    %c0_18 = arith.constant 0 : index
    %31 = vector.load %arg16[%c0_17, %c0_18] : memref<8x512xf32, #tpu.memory_space<vmem>>, vector<8x128xf32>
    tpu.vector_store %arg16[%c0_17, %c0_18], %30 {strides = array<i32>} : memref<8x512xf32, #tpu.memory_space<vmem>>, vector<8x128xf32>,
    %32 = vector.extract_strided_slice %11 {offsets = [0, 128], sizes = [8, 128], strides = [1, 1]} : vector<8x512xf32> to vector<8x128xf32>
    %c0_19 = arith.constant 0 : index
    %c128 = arith.constant 128 : index
    %33 = vector.load %arg14[%c0_19, %c128] : memref<8x512xf32, #tpu.memory_space<vmem>>, vector<8x128xf32>
    %c0_20 = arith.constant 0 : index
    %c128_21 = arith.constant 128 : index
    %34 = vector.load %arg15[%c0_20, %c128_21] : memref<8x512xf32, #tpu.memory_space<vmem>>, vector<8x128xf32>
    %cst_22 = arith.constant dense<0.000000e+00> : vector<8x8xf32>
    %35 = tpu.matmul %32, %33, %cst_22 {dimension_numbers = #tpu.dot_dimension_numbers<[1], [1], [0], [0], [0, 0, 1, 0], [], []>} : vector<8x128xf32>, vector<8x128xf32>, vector<8x8xf32> -> vector<8x8xf32>
    %cst_23 = arith.constant dense<0xFF800000> : vector<8xf32>
    %36 = vector.multi_reduction <maximumf>, %35, %cst_23 [1] : vector<8x8xf32> to vector<8xf32>
    %37 = vector.shape_cast %36 : vector<8xf32> to vector<8x1xf32>
    %38 = vector.broadcast %37 : vector<8x1xf32> to vector<8x8xf32>
    %39 = arith.subf %35, %38 : vector<8x8xf32>
    %40 = math.exp %39 : vector<8x8xf32>
    %cst_24 = arith.constant dense<0.000000e+00> : vector<8xf32>
    %41 = vector.multi_reduction <add>, %40, %cst_24 [1] : vector<8x8xf32> to vector<8xf32>
    %42 = vector.shape_cast %41 : vector<8xf32> to vector<8x1xf32>
    %cst_25 = arith.constant dense<0.000000e+00> : vector<8x128xf32>
    %43 = tpu.matmul %40, %34, %cst_25 {dimension_numbers = #tpu.dot_dimension_numbers<[1], [0], [0], [1], [0, 0, 1, 1], [], []>} : vector<8x8xf32>, vector<8x128xf32>, vector<8x128xf32> -> vector<8x128xf32>
    %44 = tpu.reciprocal %42 {approx = true} : vector<8x1xf32> -> vector<8x1xf32>
    %45 = arith.mulf %42, %44 : vector<8x1xf32>
    %cst_26 = arith.constant 2.000000e+00 : f32
    %46 = vector.broadcast %cst_26 : f32 to vector<8x1xf32>
    %47 = arith.subf %46, %45 : vector<8x1xf32>
    %48 = arith.mulf %44, %47 : vector<8x1xf32>
    %49 = vector.broadcast %48 : vector<8x1xf32> to vector<8x128xf32>
    %50 = arith.mulf %43, %49 : vector<8x128xf32>
    %c0_27 = arith.constant 0 : index
    %c128_28 = arith.constant 128 : index
    %51 = vector.load %arg16[%c0_27, %c128_28] : memref<8x512xf32, #tpu.memory_space<vmem>>, vector<8x128xf32>
    tpu.vector_store %arg16[%c0_27, %c128_28], %50 {strides = array<i32>} : memref<8x512xf32, #tpu.memory_space<vmem>>, vector<8x128xf32>,
    %52 = vector.extract_strided_slice %11 {offsets = [0, 256], sizes = [8, 128], strides = [1, 1]} : vector<8x512xf32> to vector<8x128xf32>
    %c0_29 = arith.constant 0 : index
    %c256 = arith.constant 256 : index
    %53 = vector.load %arg14[%c0_29, %c256] : memref<8x512xf32, #tpu.memory_space<vmem>>, vector<8x128xf32>
    %c0_30 = arith.constant 0 : index
    %c256_31 = arith.constant 256 : index
    %54 = vector.load %arg15[%c0_30, %c256_31] : memref<8x512xf32, #tpu.memory_space<vmem>>, vector<8x128xf32>
    %cst_32 = arith.constant dense<0.000000e+00> : vector<8x8xf32>
    %55 = tpu.matmul %52, %53, %cst_32 {dimension_numbers = #tpu.dot_dimension_numbers<[1], [1], [0], [0], [0, 0, 1, 0], [], []>} : vector<8x128xf32>, vector<8x128xf32>, vector<8x8xf32> -> vector<8x8xf32>
    %cst_33 = arith.constant dense<0xFF800000> : vector<8xf32>
    %56 = vector.multi_reduction <maximumf>, %55, %cst_33 [1] : vector<8x8xf32> to vector<8xf32>
    %57 = vector.shape_cast %56 : vector<8xf32> to vector<8x1xf32>
    %58 = vector.broadcast %57 : vector<8x1xf32> to vector<8x8xf32>
    %59 = arith.subf %55, %58 : vector<8x8xf32>
    %60 = math.exp %59 : vector<8x8xf32>
    %cst_34 = arith.constant dense<0.000000e+00> : vector<8xf32>
    %61 = vector.multi_reduction <add>, %60, %cst_34 [1] : vector<8x8xf32> to vector<8xf32>
    %62 = vector.shape_cast %61 : vector<8xf32> to vector<8x1xf32>
    %cst_35 = arith.constant dense<0.000000e+00> : vector<8x128xf32>
    %63 = tpu.matmul %60, %54, %cst_35 {dimension_numbers = #tpu.dot_dimension_numbers<[1], [0], [0], [1], [0, 0, 1, 1], [], []>} : vector<8x8xf32>, vector<8x128xf32>, vector<8x128xf32> -> vector<8x128xf32>
    %64 = tpu.reciprocal %62 {approx = true} : vector<8x1xf32> -> vector<8x1xf32>
    %65 = arith.mulf %62, %64 : vector<8x1xf32>
    %cst_36 = arith.constant 2.000000e+00 : f32
    %66 = vector.broadcast %cst_36 : f32 to vector<8x1xf32>
    %67 = arith.subf %66, %65 : vector<8x1xf32>
    %68 = arith.mulf %64, %67 : vector<8x1xf32>
    %69 = vector.broadcast %68 : vector<8x1xf32> to vector<8x128xf32>
    %70 = arith.mulf %63, %69 : vector<8x128xf32>
    %c0_37 = arith.constant 0 : index
    %c256_38 = arith.constant 256 : index
    %71 = vector.load %arg16[%c0_37, %c256_38] : memref<8x512xf32, #tpu.memory_space<vmem>>, vector<8x128xf32>
    tpu.vector_store %arg16[%c0_37, %c256_38], %70 {strides = array<i32>} : memref<8x512xf32, #tpu.memory_space<vmem>>, vector<8x128xf32>,
    %72 = vector.extract_strided_slice %11 {offsets = [0, 384], sizes = [8, 128], strides = [1, 1]} : vector<8x512xf32> to vector<8x128xf32>
    %c0_39 = arith.constant 0 : index
    %c384 = arith.constant 384 : index
    %73 = vector.load %arg14[%c0_39, %c384] : memref<8x512xf32, #tpu.memory_space<vmem>>, vector<8x128xf32>
    %c0_40 = arith.constant 0 : index
    %c384_41 = arith.constant 384 : index
    %74 = vector.load %arg15[%c0_40, %c384_41] : memref<8x512xf32, #tpu.memory_space<vmem>>, vector<8x128xf32>
    %cst_42 = arith.constant dense<0.000000e+00> : vector<8x8xf32>
    %75 = tpu.matmul %72, %73, %cst_42 {dimension_numbers = #tpu.dot_dimension_numbers<[1], [1], [0], [0], [0, 0, 1, 0], [], []>} : vector<8x128xf32>, vector<8x128xf32>, vector<8x8xf32> -> vector<8x8xf32>
    %cst_43 = arith.constant dense<0xFF800000> : vector<8xf32>
    %76 = vector.multi_reduction <maximumf>, %75, %cst_43 [1] : vector<8x8xf32> to vector<8xf32>
    %77 = vector.shape_cast %76 : vector<8xf32> to vector<8x1xf32>
    %78 = vector.broadcast %77 : vector<8x1xf32> to vector<8x8xf32>
    %79 = arith.subf %75, %78 : vector<8x8xf32>
    %80 = math.exp %79 : vector<8x8xf32>
    %cst_44 = arith.constant dense<0.000000e+00> : vector<8xf32>
    %81 = vector.multi_reduction <add>, %80, %cst_44 [1] : vector<8x8xf32> to vector<8xf32>
    %82 = vector.shape_cast %81 : vector<8xf32> to vector<8x1xf32>
    %cst_45 = arith.constant dense<0.000000e+00> : vector<8x128xf32>
    %83 = tpu.matmul %80, %74, %cst_45 {dimension_numbers = #tpu.dot_dimension_numbers<[1], [0], [0], [1], [0, 0, 1, 1], [], []>} : vector<8x8xf32>, vector<8x128xf32>, vector<8x128xf32> -> vector<8x128xf32>
    %84 = tpu.reciprocal %82 {approx = true} : vector<8x1xf32> -> vector<8x1xf32>
    %85 = arith.mulf %82, %84 : vector<8x1xf32>
    %cst_46 = arith.constant 2.000000e+00 : f32
    %86 = vector.broadcast %cst_46 : f32 to vector<8x1xf32>
    %87 = arith.subf %86, %85 : vector<8x1xf32>
    %88 = arith.mulf %84, %87 : vector<8x1xf32>
    %89 = vector.broadcast %88 : vector<8x1xf32> to vector<8x128xf32>
    %90 = arith.mulf %83, %89 : vector<8x128xf32>
    %c0_47 = arith.constant 0 : index
    %c384_48 = arith.constant 384 : index
    %91 = vector.load %arg16[%c0_47, %c384_48] : memref<8x512xf32, #tpu.memory_space<vmem>>, vector<8x128xf32>
    tpu.vector_store %arg16[%c0_47, %c384_48], %90 {strides = array<i32>} : memref<8x512xf32, #tpu.memory_space<vmem>>, vector<8x128xf32>,
    %c0_49 = arith.constant 0 : index
    %c0_50 = arith.constant 0 : index
    %92 = vector.load %arg16[%c0_49, %c0_50] : memref<8x512xf32, #tpu.memory_space<vmem>>, vector<8x512xf32>
    %c0_51 = arith.constant 0 : index
    %c0_52 = arith.constant 0 : index
    %93 = vector.load %arg8[%c0_51, %c0_52] : memref<512x32xf32, #tpu.memory_space<vmem>>, vector<512x32xf32>
    %cst_53 = arith.constant dense<0.000000e+00> : vector<8x32xf32>
    %94 = tpu.matmul %92, %93, %cst_53 {dimension_numbers = #tpu.dot_dimension_numbers<[1], [0], [0], [1], [0, 0, 1, 1], [], []>} : vector<8x512xf32>, vector<512x32xf32>, vector<8x32xf32> -> vector<8x32xf32>
    %c0_54 = arith.constant 0 : index
    %c0_55 = arith.constant 0 : index
    %95 = vector.load %arg12[%c0_54, %c0_55] : memref<1x32xf32, #tpu.memory_space<vmem>>, vector<1x32xf32>
    %96 = vector.broadcast %95 : vector<1x32xf32> to vector<8x32xf32>
    %97 = arith.addf %94, %96 : vector<8x32xf32>
    %c0_56 = arith.constant 0 : index
    %c0_57 = arith.constant 0 : index
    %c0_58 = arith.constant 0 : index
    %98 = vector.load %arg13[%c0_56, %c0_57, %c0_58] : memref<1x8x32xf32, #tpu.memory_space<vmem>>, vector<1x8x32xf32>
    %99 = vector.shape_cast %98 : vector<1x8x32xf32> to vector<8x32xf32>
    %100 = vector.shape_cast %97 : vector<8x32xf32> to vector<1x8x32xf32>
    tpu.vector_store %arg13[%c0_56, %c0_57, %c0_58], %100 {strides = array<i32>} : memref<1x8x32xf32, #tpu.memory_space<vmem>>, vector<1x8x32xf32>,
    return
  }
  func.func @transform_0(%arg0: i32, %arg1: i32) -> (i32, i32, i32) {
    %c0_i32 = arith.constant 0 : i32
    %c0_i32_0 = arith.constant 0 : i32
    return %arg0, %arg1, %c0_i32 : i32, i32, i32
  }
  func.func @transform_1(%arg0: i32, %arg1: i32) -> (i32, i32, i32) {
    %c0_i32 = arith.constant 0 : i32
    %c0_i32_0 = arith.constant 0 : i32
    %c0_i32_1 = arith.constant 0 : i32
    return %arg0, %c0_i32, %c0_i32_0 : i32, i32, i32
  }
  func.func @transform_2(%arg0: i32, %arg1: i32) -> (i32, i32, i32) {
    %c0_i32 = arith.constant 0 : i32
    %c0_i32_0 = arith.constant 0 : i32
    %c0_i32_1 = arith.constant 0 : i32
    return %arg0, %c0_i32, %c0_i32_0 : i32, i32, i32
  }
  func.func @transform_3(%arg0: i32, %arg1: i32) -> (i32, i32) {
    %c0_i32 = arith.constant 0 : i32
    %c0_i32_0 = arith.constant 0 : i32
    %c0_i32_1 = arith.constant 0 : i32
    return %c0_i32, %c0_i32_0 : i32, i32
  }
  func.func @transform_4(%arg0: i32, %arg1: i32) -> (i32, i32) {
    %c0_i32 = arith.constant 0 : i32
    %c0_i32_0 = arith.constant 0 : i32
    %c0_i32_1 = arith.constant 0 : i32
    return %c0_i32, %c0_i32_0 : i32, i32
  }
  func.func @transform_5(%arg0: i32, %arg1: i32) -> (i32, i32) {
    %c0_i32 = arith.constant 0 : i32
    %c0_i32_0 = arith.constant 0 : i32
    %c0_i32_1 = arith.constant 0 : i32
    return %c0_i32, %c0_i32_0 : i32, i32
  }
  func.func @transform_6(%arg0: i32, %arg1: i32) -> (i32, i32) {
    %c0_i32 = arith.constant 0 : i32
    %c0_i32_0 = arith.constant 0 : i32
    %c0_i32_1 = arith.constant 0 : i32
    return %c0_i32, %c0_i32_0 : i32, i32
  }
  func.func @transform_7(%arg0: i32, %arg1: i32) -> (i32, i32) {
    %c0_i32 = arith.constant 0 : i32
    %c0_i32_0 = arith.constant 0 : i32
    %c0_i32_1 = arith.constant 0 : i32
    return %c0_i32, %c0_i32_0 : i32, i32
  }
  func.func @transform_8(%arg0: i32, %arg1: i32) -> (i32, i32) {
    %c0_i32 = arith.constant 0 : i32
    %c0_i32_0 = arith.constant 0 : i32
    %c0_i32_1 = arith.constant 0 : i32
    return %c0_i32, %c0_i32_0 : i32, i32
  }
  func.func @transform_9(%arg0: i32, %arg1: i32) -> (i32, i32) {
    %c0_i32 = arith.constant 0 : i32
    %c0_i32_0 = arith.constant 0 : i32
    %c0_i32_1 = arith.constant 0 : i32
    return %c0_i32, %c0_i32_0 : i32, i32
  }
  func.func @transform_10(%arg0: i32, %arg1: i32) -> (i32, i32) {
    %c0_i32 = arith.constant 0 : i32
    %c0_i32_0 = arith.constant 0 : i32
    %c0_i32_1 = arith.constant 0 : i32
    return %c0_i32, %c0_i32_0 : i32, i32
  }
  func.func @transform_11(%arg0: i32, %arg1: i32) -> (i32, i32, i32) {
    %c0_i32 = arith.constant 0 : i32
    %c0_i32_0 = arith.constant 0 : i32
    return %arg0, %arg1, %c0_i32 : i32, i32, i32
  }
}

</mosaic_0001>

<bundles_post_ra>
// kernel: tpu_custom_call.1
= control target key start
LH: loop header
LB: loop body
LE: loop exit
PB: predicated region body
PF: predicated region fallthrough
CT: control target
= control target key end

     0   :  { %s2934_s0 = inlined_call_operand.vmem [shape: f32[2,16,32], index: 0, kind: input, shape index: {}]   ;;  %s2935_s1 = inlined_call_operand.vmem [shape: f32[2,8,32], index: 1, kind: input, shape index: {}]   ;;  %s2936_s2 = inlined_call_operand.vmem [shape: f32[2,8,32], index: 2, kind: input, shape index: {}]   ;;  %s2937_s3 = inlined_call_operand.vmem [shape: f32[32,512], index: 3, kind: input, shape index: {}]   ;;  %s2938_s4 = inlined_call_operand.vmem [shape: f32[32,512], index: 4, kind: input, shape index: {}]   ;;  %s2939_s5 = inlined_call_operand.vmem [shape: f32[32,512], index: 5, kind: input, shape index: {}]   ;;  %s2940_s6 = inlined_call_operand.vmem [shape: f32[512,32], index: 6, kind: input, shape index: {}]   ;;  %s2941_s7 = inlined_call_operand.vmem [shape: f32[1,512], index: 7, kind: input, shape index: {}]   ;;  %s2942_s8 = inlined_call_operand.vmem [shape: f32[1,512], index: 8, kind: input, shape index: {}]   ;;  %s2943_s9 = inlined_call_operand.vmem [shape: f32[1,512], index: 9, kind: input, shape index: {}]   ;;  %s2944_s10 = inlined_call_operand.vmem [shape: f32[1,32], index: 10, kind: input, shape index: {}]   ;;  %s2945_s11 = inlined_call_operand.hbm [shape: f32[2,16,32], index: 11, kind: output, shape index: {}]  }
   0x1   :  { %2957 = sst [smem:[#allocation17_spill]] %s2944_s10 }
   0x2   :  { %2958 = sst [smem:[#allocation18_spill]] %s2945_s11 }
   0x3   :  { %16 = vsyncpa [#allocation6], 0 }
   0x4   :  { %18 = vsyncpa [#allocation6 + $0x1], 0  ;;  %s2390_s17 = smov 0   ;;  %s2392_s18 = smov 0  }
   0x5   :  { %s2394_s19 = smov 0   ;;  %s2396_s20 = smov 0  }
   0x6   :  { %s2398_s21 = smov 0   ;;  %s2400_s22 = smov 0  }
   0x7   :  { %s2402_s23 = smov 0   ;;  %s2404_s24 = smov 0  }
   0x8 LB: > { %2959 = sst [smem:[#allocation8_spill]] %s2296_s17  ;;  %s1989_s25 = sadd.s32 4294967295, %s2324_s24   ;;  %s2324_s24 = sphi %s2404_s24, %s24_s24   ;;  %s2320_s23 = sphi %s2402_s23, %s2981_s23   ;;  %s2316_s22 = sphi %s2400_s22, %s2980_s22   ;;  %s2312_s21 = sphi %s2398_s21, %s2979_s21   ;;  %s2308_s20 = sphi %s2396_s20, %s2978_s20   ;;  %s2304_s19 = sphi %s2394_s19, %s2977_s19   ;;  %s2300_s18 = sphi %s2392_s18, %s2983_s18   ;;  %s2296_s17 = sphi %s2390_s17, %s2982_s17  }
   0x9   : > { %2960 = sst [smem:[#allocation9_spill]] %s2304_s19  ;;  %s1990_s26 = sadd.s32 4294967294, %s2324_s24  }
   0xa   : > { %2961 = sst [smem:[#allocation10_spill]] %s2316_s22  ;;  %s33_s27 = sadd.s32 1, %s2316_s22 }
   0xb   : > { %2962 = sst [smem:[#allocation11_spill]] %s2320_s23  ;;  %p34_p0 = scmp.ge.s32.totalorder %s33_s27, 2 }
   0xc   : > { %2963 = sst [smem:[#allocation12_spill]] %s2324_s24  ;;  %s36_s28 = sadd.s32 1, %s2320_s23 }
   0xd   : > { %p303_p1 = scmp.ne.s32.totalorder %s2304_s19, %s2300_s18  ;;  %p304_p2 = scmp.eq.s32.totalorder %s1989_s25, 3 }
   0xe   : > { %s2985_s27 = smov (%p34_p0, %s33_s27), 0  ;;  %s2987_s28 = smov (!%p34_p0, %s36_s28), %s2320_s23 }
   0xf   : > { %2964 = sst [smem:[#allocation13_spill]] %s2985_s27  ;;  %s289_s29 = ssub.s32 %s2316_s22, %s2985_s27 }
  0x10   : > { %p2441_p3 = por %p304_p2, %p303_p1  ;;  %p38_p4 = scmp.ge.s32.totalorder %s2987_s28, 2 }
  0x11   : > { %p309_p5 = scmp.ne.s32.totalorder %s2300_s18, %s2296_s17  ;;  %p310_p6 = scmp.eq.s32.totalorder %s1990_s26, 3 }
  0x12   : > { %p1993_p7 = scmp.ge.s32.totalorder %s2324_s24, 1  ;;  %s2989_s28 = smov (%p38_p4, %s2987_s28), 0 }
  0x13   : > { %2966 = sst [smem:[#allocation14_spill]] %s2989_s28  ;;  %p2450_p8 = por %p310_p6, %p309_p5 }
  0x14   : > { %p377_p9 = scmp.lt.s32.totalorder %s2324_s24, 5  ;;  %s288_s13 = ssub.s32 %s2320_s23, %s2989_s28 }
  0x15   : > { %s2967_s12 = scalar_select %p2450_p8, 1, 0 }
  0x16   : > { %s293_s14 = sadd.s32 1, %s2304_s19  ;;  %s290_s15 = sor.u32 %s289_s29, %s288_s13 }
  0x17   : > { %2968 = sst [smem:[#allocation15_spill]] %s2967_s12  ;;  %p378_p10 = pnand %p1993_p7, %p377_p9 }
  0x18   : > { %p291_p11 = scmp.eq.s32.totalorder %s290_s15, 0  ;;  %s2953_s25 = sand.u32 (!%p378_p10), 1, %s2300_s18  }
  0x19   : > { %381 = sbr.rel (%p378_p10) target bundleno = 1234 (0x4d2), region = 64  ;;  %p428_p12 = scmp.lt.s32.totalorder (!%p378_p10), %s2312_s21, 1 }
  0x1a   : > { %s2459_s16 = scalar_select %p291_p11, %s2304_s19, %s293_s14  }
  0x1b   : > { %s2465_s26 = sshll.u32 (!%p378_p10), %s2953_s25, 3  ;;  %p430_p13 = scmp.lt.s32.totalorder (!%p378_p10), %s2308_s20, 1 }
  0x1c   : > { %2969 = sst [smem:[#allocation16_spill]] %s2459_s16  ;;  %s427_s10 = scalar_lea.vmem (!%p378_p10), [#allocation5], %s2465_s26 }
  0x1d   : > { %p1999_p0 = scmp.ne.s32.totalorder (!%p378_p10), %s2308_s20, 0 }
  0x1e   : > { %s429_s28 = scalar_select %p428_p12, %s2312_s21, 1 }
  0x1f   : > { %s431_s29 = scalar_select %p430_p13, %s2308_s20, 1 }
  0x20   : > { %s1995_s13 = sshll.u32 %s429_s28, 1  ;;  %s1997_s15 = sshll.u32 %s429_s28, 3 }
  0x21   : > { %s433_s14 = sadd.s32 %s1995_s13, %s431_s29  ;;  %s2473_s22 = scalar_lea.vmem %s2935_s1, %s1997_s15 }
  0x22   : > { %s1996_s16 = sshll.u32 %s433_s14, 3  ;;  %s2478_s17 = scalar_lea.vmem %s2936_s2, %s1997_s15 }
  0x23   : > { %s2483_s11 = scalar_lea.vmem %s2934_s0, %s1996_s16  ;;  %447 = sbr.rel (%p1999_p0) target bundleno = 258 (0x102), region = 68 }
  0x28   : > { %v462_v0 = vld [vmem:[%s2938_s4 + $0x68] sm:$0xff]  ;;  %v464_v1 = vld [vmem:[%s2938_s4 + $0x78] sm:$0xff]  ;;  %v461_v2 = vld [vmem:[%s2938_s4 + $0x60] sm:$0xff]  ;;  %vm487_vm0 = vcmask 261120   ;;  %v2326_v17 = vmov 0.0   ;;  %v467_v35 = vlaneseq }
  0x29   : > { %515 = vmatprep.subr.mxu0 %v462_v0  ;;  %586 = vmatprep.subr.mxu1 %v464_v1  ;;  %v463_v3 = vld [vmem:[%s2938_s4 + $0x70] sm:$0xff]  ;;  %v458_v4 = vld [vmem:[%s2938_s4 + $0x48] sm:$0xff]  ;;  %v460_v5 = vld [vmem:[%s2938_s4 + $0x58] sm:$0xff] }
  0x2a   : > { %516 = vmatpush1.msra.mxu0 %v461_v2  ;;  %587 = vmatpush1.msra.mxu1 %v463_v3  ;;  %v457_v6 = vld [vmem:[%s2938_s4 + $0x40] sm:$0xff]  ;;  %v459_v7 = vld [vmem:[%s2938_s4 + $0x50] sm:$0xff]  ;;  %v454_v8 = vld [vmem:[%s2938_s4 + $0x28] sm:$0xff]  ;;  %v468_v36 = vshrl.u32 %v467_v35, 7 }
  0x2b   : > { %517 = vmatprep.subr.mxu0 %v458_v4  ;;  %588 = vmatprep.subr.mxu1 %v460_v5  ;;  %v456_v9 = vld [vmem:[%s2938_s4 + $0x38] sm:$0xff]  ;;  %v453_v10 = vld [vmem:[%s2938_s4 + $0x20] sm:$0xff]  ;;  %v455_v11 = vld [vmem:[%s2938_s4 + $0x30] sm:$0xff] }
  0x2c   : > { %518 = vmatpush1.msra.mxu0 %v457_v6  ;;  %589 = vmatpush1.msra.mxu1 %v459_v7  ;;  %v450_v12 = vld [vmem:[%s2938_s4 + $0x8] sm:$0xff]  ;;  %v452_v13 = vld [vmem:[%s2938_s4 + $0x18] sm:$0xff]  ;;  %v449_v14 = vld [vmem:[%s2938_s4] sm:$0xff]  ;;  %v469_v37 = vsub.s32 0, %v468_v36  ;;  %v477_v38 = vsub.s32 2, %v468_v36  ;;  %v473_v40 = vsub.s32 1, %v468_v36 }
  0x2d   : > { %519 = vmatprep.subr.mxu0 %v454_v8  ;;  %590 = vmatprep.subr.mxu1 %v456_v9  ;;  %v451_v15 = vld [vmem:[%s2938_s4 + $0x10] sm:$0xff]  ;;  %v448_v16 = vld [vmem:[%s2473_s22] sm:$0xff]  ;;  %v647_v18 = vld [vmem:[%s2939_s5 + $0x68] sm:$0xff]  ;;  %v481_v41 = vsub.s32 3, %v468_v36 }
  0x2e   : > { %520 = vmatpush1.msra.mxu0 %v453_v10  ;;  %591 = vmatpush1.msra.mxu1 %v455_v11  ;;  %v649_v19 = vld [vmem:[%s2939_s5 + $0x78] sm:$0xff]  ;;  %v646_v20 = vld [vmem:[%s2939_s5 + $0x60] sm:$0xff]  ;;  %v648_v21 = vld [vmem:[%s2939_s5 + $0x70] sm:$0xff] }
  0x2f   : > { %521 = vmatprep.subr.mxu0 %v450_v12  ;;  %592 = vmatprep.subr.mxu1 %v452_v13  ;;  %v643_v22 = vld [vmem:[%s2939_s5 + $0x48] sm:$0xff]  ;;  %v645_v23 = vld [vmem:[%s2939_s5 + $0x58] sm:$0xff]  ;;  %v642_v24 = vld [vmem:[%s2939_s5 + $0x40] sm:$0xff] }
  0x30   : > { %522 = vmatpush1.msra.mxu0 %v449_v14  ;;  %555 = vmatprep.mubr.f32.mxu0 %v2326_v17  ;;  %v644_v25 = vld [vmem:[%s2939_s5 + $0x50] sm:$0xff]  ;;  %v639_v26 = vld [vmem:[%s2939_s5 + $0x28] sm:$0xff]  ;;  %v641_v27 = vld [vmem:[%s2939_s5 + $0x38] sm:$0xff] }
  0x31   : > { %593 = vmatpush1.msra.mxu1 %v451_v15  ;;  %626 = vmatprep.mubr.f32.mxu1 %v2326_v17  ;;  %v638_v28 = vld [vmem:[%s2939_s5 + $0x20] sm:$0xff]  ;;  %v640_v29 = vld [vmem:[%s2939_s5 + $0x30] sm:$0xff]  ;;  %v635_v30 = vld [vmem:[%s2939_s5 + $0x8] sm:$0xff] }
  0x32   : > { %2000 = vmatmul.mubr.msk.f32.vlgmr.msra.gmra.mxu0 %vm487_vm0, %v448_v16  ;;  %2001 = vmatmul.mubr.msk.f32.vlgmr.msra.gmra.mxu1 %vm487_vm0, %v448_v16  ;;  %v637_v31 = vld [vmem:[%s2939_s5 + $0x18] sm:$0xff]  ;;  %v634_v32 = vld [vmem:[%s2939_s5] sm:$0xff]  ;;  %v636_v33 = vld [vmem:[%s2939_s5 + $0x10] sm:$0xff] }
  0x33   : > { %699 = vmatprep.subr.mxu0 %v647_v18  ;;  %770 = vmatprep.subr.mxu1 %v649_v19  ;;  %v633_v34 = vld [vmem:[%s2478_s17] sm:$0xff] }
  0x34   : > { %700 = vmatpush1.msra.mxu0 %v646_v20  ;;  %771 = vmatpush1.msra.mxu1 %v648_v21  ;;  %v465_v39 = vld [vmem:[%s2942_s8] sm:$0xf] }
  0x35   : > { %701 = vmatprep.subr.mxu0 %v643_v22  ;;  %772 = vmatprep.subr.mxu1 %v645_v23  ;;  %v470_v42 = vrot.slane %v465_v39, %v469_v37  ;;  %v478_v43 = vrot.slane %v465_v39, %v477_v38  ;;  %v474_v44 = vrot.slane %v465_v39, %v473_v40  ;;  %v650_v54 = vld [vmem:[%s2943_s9] sm:$0xf] }
  0x36   : > { %702 = vmatpush1.msra.mxu0 %v642_v24  ;;  %773 = vmatpush1.msra.mxu1 %v644_v25  ;;  %v482_v45 = vrot.slane %v465_v39, %v481_v41  ;;  %v655_v55 = vrot.slane %v650_v54, %v469_v37  ;;  %v663_v56 = vrot.slane %v650_v54, %v477_v38 }
  0x37   : > { %703 = vmatprep.subr.mxu0 %v639_v26  ;;  %774 = vmatprep.subr.mxu1 %v641_v27  ;;  %v659_v57 = vrot.slane %v650_v54, %v473_v40  ;;  %v667_v58 = vrot.slane %v650_v54, %v481_v41 }
  0x38   : > { %704 = vmatpush1.msra.mxu0 %v638_v28  ;;  %775 = vmatpush1.msra.mxu1 %v640_v29 }
  0x39   : > { %705 = vmatprep.subr.mxu0 %v635_v30  ;;  %776 = vmatprep.subr.mxu1 %v637_v31 }
  0x3a   : > { %706 = vmatpush1.msra.mxu0 %v634_v32  ;;  %739 = vmatprep.mubr.f32.mxu0 %v2326_v17 }
  0x3b   : > { %777 = vmatpush1.msra.mxu1 %v636_v33  ;;  %810 = vmatprep.mubr.f32.mxu1 %v2326_v17 }
  0x3c   : > { %2002 = vmatmul.mubr.msk.f32.vlgmr.msra.gmra.mxu0 %vm487_vm0, %v633_v34  ;;  %2003 = vmatmul.mubr.msk.f32.vlgmr.msra.gmra.mxu1 %vm487_vm0, %v633_v34 }
  0xf2   : > { %v557_v46 = vpop.f32.mrf.mxu0  ;;  %v628_v47 = vpop.f32.mrf.mxu1 }
  0xf3   : > { %v558_v48 = vadd.f32 %v557_v46, %v470_v42  ;;  %v629_v49 = vadd.f32 %v628_v47, %v478_v43 }
  0xf4   : > { %v559_v50 = vpop.f32.mrf.mxu0  ;;  %v630_v51 = vpop.f32.mrf.mxu1 }
  0xf5   : > { %817 = vst [vmem:[#allocation2 + $0x10] sm:$0xff] %v558_v48  ;;  %819 = vst [vmem:[#allocation2 + $0x18] sm:$0xff] %v629_v49  ;;  %v560_v52 = vadd.f32 %v559_v50, %v474_v44  ;;  %v631_v53 = vadd.f32 %v630_v51, %v482_v45 }
  0xf7   : > { %818 = vst [vmem:[#allocation2] sm:$0xff] %v560_v52  ;;  %820 = vst [vmem:[#allocation2 + $0x8] sm:$0xff] %v631_v53 }
  0xfc   : > { %v741_v59 = vpop.f32.mrf.mxu0  ;;  %v812_v60 = vpop.f32.mrf.mxu1 }
  0xfd   : > { %v742_v61 = vadd.f32 %v741_v59, %v655_v55  ;;  %v813_v62 = vadd.f32 %v812_v60, %v663_v56 }
  0xfe   : > { %v743_v63 = vpop.f32.mrf.mxu0  ;;  %v814_v0 = vpop.f32.mrf.mxu1 }
  0xff   : > { %821 = vst [vmem:[#allocation3] sm:$0xff] %v742_v61  ;;  %823 = vst [vmem:[#allocation3 + $0x8] sm:$0xff] %v813_v62  ;;  %v744_v1 = vadd.f32 %v743_v63, %v659_v57  ;;  %v815_v2 = vadd.f32 %v814_v0, %v667_v58 }
 0x101   : > { %822 = vst [vmem:[#allocation3 + $0x18] sm:$0xff] %v744_v1  ;;  %824 = vst [vmem:[#allocation3 + $0x10] sm:$0xff] %v815_v2 }
 0x102 PF: > { %v839_v3 = vld [vmem:[%s2937_s3 + $0x68] sm:$0xff]  ;;  %v838_v4 = vld [vmem:[%s2937_s3 + $0x60] sm:$0xff]  ;;  %v2327_v7 = vmov 0.0   ;;  %v841_v9 = vld [vmem:[%s2937_s3 + $0x78] sm:$0xff]  ;;  %vm864_vm1 = vcmask 261120   ;;  %vm2328_vm2 = vmmov 0   ;;  %v844_v22 = vlaneseq }
 0x103   : > { %v835_v5 = vld [vmem:[%s2937_s3 + $0x48] sm:$0xff]  ;;  %892 = vmatprep.subr.mxu0 %v839_v3  ;;  %v834_v6 = vld [vmem:[%s2937_s3 + $0x40] sm:$0xff]  ;;  %932 = vmatprep.mubr.f32.mxu0 %v2327_v7  ;;  %v840_v11 = vld [vmem:[%s2937_s3 + $0x70] sm:$0xff]  ;;  %vm1086_vm3 = vcmask 64512   ;;  %s2012_s27 = sshll.u32 %s2312_s21, 1  ;;  %s2970_s16 = sld [smem:[#allocation17_spill]] }
 0x104   : > { %893 = vmatpush1.msra.mxu0 %v838_v4  ;;  %v831_v8 = vld [vmem:[%s2937_s3 + $0x28] sm:$0xff]  ;;  %1003 = vmatprep.mubr.f32.mxu1 %v2327_v7  ;;  %v830_v10 = vld [vmem:[%s2937_s3 + $0x20] sm:$0xff]  ;;  %v837_v12 = vld [vmem:[%s2937_s3 + $0x58] sm:$0xff]  ;;  %v845_v23 = vshrl.u32 %v844_v22, 7  ;;  %s1883_s19 = sadd.s32 %s2308_s20, %s2012_s27  ;;  %s1887_s25 = sshll.u32 %s427_s10, 4  ;;  %s1888_s25 = int_to_ptr.vmem [resolvable:$true] %s1887_s25 }
 0x105   : > { %894 = vmatprep.subr.mxu0 %v835_v5  ;;  %963 = vmatprep.subr.mxu1 %v841_v9  ;;  %v827_v13 = vld [vmem:[%s2937_s3 + $0x8] sm:$0xff]  ;;  %v836_v14 = vld [vmem:[%s2937_s3 + $0x50] sm:$0xff]  ;;  %v833_v15 = vld [vmem:[%s2937_s3 + $0x38] sm:$0xff]  ;;  %s2971_s14 = sld [smem:[#allocation18_spill]]  ;;  %s2972_s20 = sand.u32 1, %s2300_s18  }
 0x106   : > { %895 = vmatpush1.msra.mxu0 %v834_v6  ;;  %964 = vmatpush1.msra.mxu1 %v840_v11  ;;  %v826_v16 = vld [vmem:[%s2937_s3] sm:$0xff]  ;;  %v832_v17 = vld [vmem:[%s2937_s3 + $0x30] sm:$0xff]  ;;  %v829_v19 = vld [vmem:[%s2937_s3 + $0x18] sm:$0xff]  ;;  %v846_v24 = vsub.s32 0, %v845_v23  ;;  %v850_v26 = vsub.s32 1, %v845_v23  ;;  %v854_v28 = vsub.s32 2, %v845_v23 }
 0x107   : > { %896 = vmatprep.subr.mxu0 %v831_v8  ;;  %965 = vmatprep.subr.mxu1 %v837_v12  ;;  %v825_v18 = vld [vmem:[%s2483_s11] sm:$0xff]  ;;  %v828_v20 = vld [vmem:[%s2937_s3 + $0x10] sm:$0xff]  ;;  %v858_v37 = vsub.s32 3, %v845_v23  ;;  %v1335_v42 = vld [vmem:[#allocation2 + $0x18] sm:$0xff]  ;;  %s2013_s11 = sshll.u32 %s1883_s19, 7  ;;  %s1872_s21 = scalar_lea.sflag [#allocation6], %s2972_s20 }
 0x108   : > { %897 = vmatpush1.msra.mxu0 %v830_v10  ;;  %966 = vmatpush1.msra.mxu1 %v836_v14  ;;  %v1014_v21 = vld [vmem:[#allocation2 + $0x10] sm:$0xff]  ;;  %v842_v25 = vld [vmem:[%s2941_s7] sm:$0xf]  ;;  %v1495_v46 = vld [vmem:[#allocation2 + $0x8] sm:$0xff]  ;;  %s2232_s29 = scalar_lea.vmem %s1888_s25, 128  ;;  %s2329_s23 = smov [#allocation5]  }
 0x109   : > { %898 = vmatprep.subr.mxu0 %v827_v13  ;;  %967 = vmatprep.subr.mxu1 %v833_v15  ;;  %v847_v27 = vrot.slane %v842_v25, %v846_v24  ;;  %v851_v29 = vrot.slane %v842_v25, %v850_v26  ;;  %v855_v32 = vrot.slane %v842_v25, %v854_v28  ;;  %v1175_v36 = vld [vmem:[#allocation2] sm:$0xff]  ;;  %v1176_v10 = vld [vmem:[#allocation3 + $0x18] sm:$0xff]  ;;  %v1336_v13 = vld [vmem:[#allocation3 + $0x8] sm:$0xff]  ;;  %p2233_p1 = scmp.ne.s32.totalorder %s1888_s25, %s2232_s29  ;;  %s2236_s22 = sshll.u32 %s2329_s23, 4  ;;  %s2237_s22 = int_to_ptr.vmem [resolvable:$false] %s2236_s22 }
 0x10a   : > { %899 = vmatpush1.msra.mxu0 %v826_v16  ;;  %968 = vmatpush1.msra.mxu1 %v832_v17  ;;  %v859_v41 = vrot.slane %v842_v25, %v858_v37  ;;  %v1015_v60 = vld [vmem:[#allocation3] sm:$0xff]  ;;  %v1496_v16 = vld [vmem:[#allocation3 + $0x10] sm:$0xff]  ;;  %v1674_v22 = vld [vmem:[%s2940_s6 + $0x78] sm:$0xff]  ;;  %s2238_s17 = scalar_lea.vmem %s2237_s22, 256  ;;  %p2239_p5 = scmp.lt.s32.totalorder %s1888_s25, %s2237_s22 }
 0x10b   : > { %2004 = vmatmul.mubr.msk.f32.vlgmr.msra.gmra.mxu0 %vm864_vm1, %v825_v18  ;;  %969 = vmatprep.subr.mxu1 %v829_v19  ;;  %v1689_v23 = vld [vmem:[%s2940_s6 + $0xf0] sm:$0xff]  ;;  %v1688_v24 = vld [vmem:[%s2940_s6 + $0xe8] sm:$0xff]  ;;  %v1722_v26 = vld [vmem:[%s2940_s6 + $0x1f8] sm:$0xff]  ;;  %s1885_s28 = scalar_lea.hbm %s2971_s14, %s2013_s11  ;;  %p2234_p2 = pnand %p2233_p1, %p2441_p3 }
 0x10c   : > { %970 = vmatpush1.msra.mxu1 %v828_v20  ;;  %2102 = vmatprep.subr.mxu0 %v2327_v7  ;;  %v1672_v25 = vld [vmem:[%s2940_s6 + $0x68] sm:$0xff]  ;;  %v1687_v28 = vld [vmem:[%s2940_s6 + $0xe0] sm:$0xff]  ;;  %v1685_v37 = vld [vmem:[%s2940_s6 + $0xd0] sm:$0xff]  ;;  %p2240_p6 = scmp.lt.s32.totalorder %s2238_s17, %s2232_s29 }
 0x10d   : > { %2005 = vmatmul.mubr.msk.f32.vlgmr.msra.gmra.mxu1 %vm864_vm1, %v825_v18  ;;  %2107 = vmatprep.subr.mxu1 %v2327_v7  ;;  %p2235_p4 = pneg %p2234_p2 }
 0x10e   : > { %2103 = vmatpush3.xpose.msra.mxu0 %v1014_v21  ;;  %2104 = vmatprep.mubr.msk.f32.mxu0 %vm2328_vm2, %v2327_v7  ;;  %v1690_v21 = vld [vmem:[%s2940_s6 + $0xf8] sm:$0xff]  ;;  %p2241_p7 = por %p2240_p6, %p2239_p5 }
 0x10f   : > { %2112 = vmatprep.subr.mxu0 %v2327_v7  ;;  %2109 = vmatprep.mubr.msk.f32.mxu1 %vm2328_vm2, %v2327_v7 }
 0x110   : > { %2108 = vmatpush3.msra.mxu1 %v1015_v60  ;;  %v1678_v60 = vld [vmem:[%s2940_s6 + $0x98] sm:$0xff]  ;;  %p2242_p9 = pnand %p2241_p7, %p2235_p4 }
 0x111   : > { %2117 = vmatprep.subr.mxu1 %v2327_v7 }
 0x1cb   : > { %v934_v30 = vpop.f32.mrf.mxu0 }
 0x1cc   : > { %v935_v31 = vadd.f32 %v934_v30, %v847_v27  ;;  %v1706_v27 = vld [vmem:[%s2940_s6 + $0x178] sm:$0xff]  ;;  %v1671_v30 = vld [vmem:[%s2940_s6 + $0x60] sm:$0xff] }
 0x1cd   : > { %v936_v33 = vpop.f32.mrf.mxu0  ;;  %v1005_v38 = vpop.f32.mrf.mxu1 }
 0x1ce   : > { %v1010_v34 = vmul.f32 0.35355338, %v935_v31  ;;  %v937_v35 = vadd.f32 %v936_v33, %v851_v29  ;;  %v1006_v39 = vadd.f32 %v1005_v38, %v855_v32  ;;  %v1721_v29 = vld [vmem:[%s2940_s6 + $0x1f0] sm:$0xff]  ;;  %v1720_v32 = vld [vmem:[%s2940_s6 + $0x1e8] sm:$0xff]  ;;  %v1686_v33 = vld [vmem:[%s2940_s6 + $0xd8] sm:$0xff] }
 0x1cf   : > { %v1007_v43 = vpop.f32.mrf.mxu1  ;;  %v1705_v31 = vld [vmem:[%s2940_s6 + $0x170] sm:$0xff]  ;;  %v1703_v38 = vld [vmem:[%s2940_s6 + $0x160] sm:$0xff] }
 0x1d0   : > { %2105 = vmatmul.mubr.f32.vlgmr.msra.gmra.mxu0 %v1010_v34  ;;  %v1011_v40 = vmul.f32 0.35355338, %v937_v35  ;;  %v1012_v44 = vmul.f32 0.35355338, %v1006_v39  ;;  %v1008_v45 = vadd.f32 %v1007_v43, %v859_v41  ;;  %v1704_v34 = vld [vmem:[%s2940_s6 + $0x168] sm:$0xff]  ;;  %v1670_v35 = vld [vmem:[%s2940_s6 + $0x58] sm:$0xff] }
 0x1d1   : > { %2113 = vmatpush3.xpose.msra.mxu0 %v1175_v36  ;;  %2114 = vmatprep.mubr.msk.f32.mxu0 %vm2328_vm2, %v2327_v7  ;;  %v1719_v36 = vld [vmem:[%s2940_s6 + $0x1e0] sm:$0xff]  ;;  %v1669_v39 = vld [vmem:[%s2940_s6 + $0x50] sm:$0xff]  ;;  %v1684_v41 = vld [vmem:[%s2940_s6 + $0xc8] sm:$0xff] }
 0x1d2   : > { %2122 = vmatprep.subr.mxu0 %v2327_v7  ;;  %v1013_v47 = vmul.f32 0.35355338, %v1008_v45  ;;  %v1668_v43 = vld [vmem:[%s2940_s6 + $0x48] sm:$0xff]  ;;  %v1683_v45 = vld [vmem:[%s2940_s6 + $0xc0] sm:$0xff] }
 0x1d4   : > { %2115 = vmatmul.mubr.f32.vlgmr.msra.gmra.mxu0 %v1011_v40  ;;  %v1718_v40 = vld [vmem:[%s2940_s6 + $0x1d8] sm:$0xff] }
 0x1d5   : > { %2123 = vmatpush3.xpose.msra.mxu0 %v1335_v42  ;;  %2124 = vmatprep.mubr.msk.f32.mxu0 %vm2328_vm2, %v2327_v7  ;;  %v1702_v42 = vld [vmem:[%s2940_s6 + $0x158] sm:$0xff] }
 0x1d6   : > { %2132 = vmatprep.subr.mxu0 %v2327_v7 }
 0x1d8   : > { %2125 = vmatmul.mubr.f32.vlgmr.msra.gmra.mxu0 %v1012_v44  ;;  %v1717_v44 = vld [vmem:[%s2940_s6 + $0x1d0] sm:$0xff] }
 0x1d9   : > { %2133 = vmatpush3.xpose.msra.mxu0 %v1495_v46  ;;  %2134 = vmatprep.mubr.msk.f32.mxu0 %vm2328_vm2, %v2327_v7  ;;  %v1701_v46 = vld [vmem:[%s2940_s6 + $0x150] sm:$0xff] }
 0x1da   : > { %2032 = vmatprep.subr.mxu0 %v1690_v21 }
 0x1dc   : > { %2135 = vmatmul.mubr.f32.vlgmr.msra.gmra.mxu0 %v1013_v47  ;;  %v1667_v47 = vld [vmem:[%s2940_s6 + $0x40] sm:$0xff] }
 0x1dd   : > { %2033 = vmatpush3.msra.mxu0 %v1674_v22 }
 0x1de   : > { %2034 = vmatprep.subr.mxu0 %v1689_v23 }
 0x290   : > { %v1082_v48 = vpop.f32.mrf.mxu0 }
 0x291   : > { %v1087_v49 = vsel %vm1086_vm3, %v1082_v48, -inf }
 0x292   : > { %1088 = vmax.xlane.f32.xlu0 %v1087_v49  ;;  %v2106_v50 = vpop.f32.mrf.mxu0  ;;  %v1682_v49 = vld [vmem:[%s2940_s6 + $0xb8] sm:$0xff] }
 0x293   : > { %v1700_v50 = vld [vmem:[%s2940_s6 + $0x148] sm:$0xff] }
 0x294   : > { %v1243_v51 = vpop.f32.mrf.mxu0 }
 0x295   : > { %v1247_v52 = vsel %vm1086_vm3, %v1243_v51, -inf }
 0x296   : > { %1248 = vmax.xlane.f32.xlu0 %v1247_v52  ;;  %v2116_v53 = vpop.f32.mrf.mxu0  ;;  %v1715_v52 = vld [vmem:[%s2940_s6 + $0x1c0] sm:$0xff] }
 0x297   : > { %v1681_v53 = vld [vmem:[%s2940_s6 + $0xb0] sm:$0xff] }
 0x298   : > { %v1403_v54 = vpop.f32.mrf.mxu0 }
 0x299   : > { %v1407_v55 = vsel %vm1086_vm3, %v1403_v54, -inf }
 0x29a   : > { %1408 = vmax.xlane.f32.xlu1 %v1407_v55  ;;  %v2126_v56 = vpop.f32.mrf.mxu0  ;;  %v1665_v55 = vld [vmem:[%s2940_s6 + $0x30] sm:$0xff] }
 0x29b   : > { %v1680_v56 = vld [vmem:[%s2940_s6 + $0xa8] sm:$0xff] }
 0x29c   : > { %v1563_v57 = vpop.f32.mrf.mxu0 }
 0x29d   : > { %v1567_v58 = vsel %vm1086_vm3, %v1563_v57, -inf }
 0x29e   : > { %1568 = vmax.xlane.f32.xlu1 %v1567_v58  ;;  %v2136_v59 = vpop.f32.mrf.mxu0  ;;  %v1679_v58 = vld [vmem:[%s2940_s6 + $0xa0] sm:$0xff] }
 0x29f   : > { %v1663_v59 = vld [vmem:[%s2940_s6 + $0x20] sm:$0xff] }
 0x31b   : > { %v1089_v61 = vpop.xlane.xlu0 %1088 }
 0x31c   : > { %v1090_v62 = vsub.f32 %v1082_v48, %v1089_v61  ;;  %v1716_v48 = vld [vmem:[%s2940_s6 + $0x1c8] sm:$0xff]  ;;  %v1714_v61 = vld [vmem:[%s2940_s6 + $0x1b8] sm:$0xff] }
 0x31e   : > { %v1091_v63 = vmul.f32 1.442695, %v1090_v62  ;;  %v1662_v62 = vld [vmem:[%s2940_s6 + $0x18] sm:$0xff] }
 0x31f   : > { %v1249_v0 = vpop.xlane.xlu0 %1248 }
 0x320   : > { %2216 = vpow2.f32 %v1091_v63  ;;  %v1250_v1 = vsub.f32 %v1243_v51, %v1249_v0  ;;  %v1666_v51 = vld [vmem:[%s2940_s6 + $0x38] sm:$0xff]  ;;  %v1677_v0 = vld [vmem:[%s2940_s6 + $0x90] sm:$0xff] }
 0x321   : > { %v1698_v63 = vld [vmem:[%s2940_s6 + $0x138] sm:$0xff] }
 0x322   : > { %v1251_v2 = vmul.f32 1.442695, %v1250_v1  ;;  %v1713_v1 = vld [vmem:[%s2940_s6 + $0x1b0] sm:$0xff] }
 0x323   : > { %v1409_v3 = vpop.xlane.xlu1 %1408 }
 0x324   : > { %2218 = vpow2.f32 %v1251_v2  ;;  %v1410_v4 = vsub.f32 %v1403_v54, %v1409_v3  ;;  %v1699_v54 = vld [vmem:[%s2940_s6 + $0x140] sm:$0xff]  ;;  %v1661_v2 = vld [vmem:[%s2940_s6 + $0x10] sm:$0xff] }
 0x325   : > { %v1697_v3 = vld [vmem:[%s2940_s6 + $0x130] sm:$0xff] }
 0x326   : > { %v1411_v5 = vmul.f32 1.442695, %v1410_v4  ;;  %v1676_v4 = vld [vmem:[%s2940_s6 + $0x88] sm:$0xff] }
 0x327   : > { %v1569_v6 = vpop.xlane.xlu1 %1568 }
 0x328   : > { %2220 = vpow2.f32 %v1411_v5  ;;  %v1570_v8 = vsub.f32 %v1563_v57, %v1569_v6  ;;  %v1664_v57 = vld [vmem:[%s2940_s6 + $0x28] sm:$0xff] }
 0x329   : > { %v1712_v5 = vld [vmem:[%s2940_s6 + $0x1a8] sm:$0xff] }
 0x32a   : > { %v1571_v9 = vmul.f32 1.442695, %v1570_v8  ;;  %v1660_v6 = vld [vmem:[%s2940_s6 + $0x8] sm:$0xff] }
 0x32b   : > { %v1696_v8 = vld [vmem:[%s2940_s6 + $0x128] sm:$0xff] }
 0x32c   : > { %2222 = vpow2.f32 %v1571_v9  ;;  %v1675_v9 = vld [vmem:[%s2940_s6 + $0x80] sm:$0xff] }
 0x32d   : > { %v2217_v11 = vpop.eup %2216 }
 0x32e   : > { %2110 = vmatmul.mubr.msk.f32.vlgmr.msra.gmra.mxu1 %vm1086_vm3, %v2217_v11  ;;  %v1093_v12 = vsel %vm1086_vm3, %v2217_v11, 0.0  ;;  %v1659_v11 = vld [vmem:[%s2940_s6] sm:$0xff] }
 0x32f   : > { %2118 = vmatpush3.msra.mxu1 %v1176_v10  ;;  %1094 = vadd.xlane.f32.xlu1 %v1093_v12  ;;  %v1711_v10 = vld [vmem:[%s2940_s6 + $0x1a0] sm:$0xff] }
 0x330   : > { %2119 = vmatprep.mubr.msk.f32.mxu1 %vm2328_vm2, %v2327_v7  ;;  %2127 = vmatprep.subr.mxu1 %v2327_v7  ;;  %v1695_v12 = vld [vmem:[%s2940_s6 + $0x120] sm:$0xff] }
 0x331   : > { %v2219_v14 = vpop.eup %2218 }
 0x332   : > { %2120 = vmatmul.mubr.msk.f32.vlgmr.msra.gmra.mxu1 %vm1086_vm3, %v2219_v14  ;;  %v1253_v15 = vsel %vm1086_vm3, %v2219_v14, 0.0  ;;  %v1694_v14 = vld [vmem:[%s2940_s6 + $0x118] sm:$0xff] }
 0x333   : > { %2128 = vmatpush3.msra.mxu1 %v1336_v13  ;;  %1254 = vadd.xlane.f32.xlu0 %v1253_v15  ;;  %v1710_v13 = vld [vmem:[%s2940_s6 + $0x198] sm:$0xff]  ;;  %v1709_v15 = vld [vmem:[%s2940_s6 + $0x190] sm:$0xff] }
 0x334   : > { %2129 = vmatprep.mubr.msk.f32.mxu1 %vm2328_vm2, %v2327_v7  ;;  %2137 = vmatprep.subr.mxu1 %v2327_v7 }
 0x335   : > { %v2221_v17 = vpop.eup %2220 }
 0x336   : > { %2130 = vmatmul.mubr.msk.f32.vlgmr.msra.gmra.mxu1 %vm1086_vm3, %v2221_v17  ;;  %v1413_v18 = vsel %vm1086_vm3, %v2221_v17, 0.0  ;;  %v1708_v17 = vld [vmem:[%s2940_s6 + $0x188] sm:$0xff] }
 0x337   : > { %2138 = vmatpush3.msra.mxu1 %v1496_v16  ;;  %1414 = vadd.xlane.f32.xlu1 %v1413_v18  ;;  %v1693_v16 = vld [vmem:[%s2940_s6 + $0x110] sm:$0xff]  ;;  %v1692_v18 = vld [vmem:[%s2940_s6 + $0x108] sm:$0xff] }
 0x338   : > { %2139 = vmatprep.mubr.msk.f32.mxu1 %vm2328_vm2, %v2327_v7  ;;  %v1673_v7 = vld [vmem:[%s2940_s6 + $0x70] sm:$0xff]  ;;  %2067 = vmatprep.subr.mxu1 %v1722_v26 }
 0x339   : > { %v2223_v19 = vpop.eup %2222  ;;  %2035 = vmatpush3.msra.mxu0 %v1673_v7 }
 0x33a   : > { %2140 = vmatmul.mubr.msk.f32.vlgmr.msra.gmra.mxu1 %vm1086_vm3, %v2223_v19  ;;  %v1573_v20 = vsel %vm1086_vm3, %v2223_v19, 0.0  ;;  %2036 = vmatprep.subr.mxu0 %v1688_v24  ;;  %v1707_v19 = vld [vmem:[%s2940_s6 + $0x180] sm:$0xff] }
 0x33b   : > { %1574 = vadd.xlane.f32.xlu0 %v1573_v20  ;;  %2068 = vmatpush3.msra.mxu1 %v1706_v27  ;;  %v1691_v20 = vld [vmem:[%s2940_s6 + $0x100] sm:$0xff] }
 0x33c   : > { %2037 = vmatpush3.msra.mxu0 %v1672_v25  ;;  %2069 = vmatprep.subr.mxu1 %v1721_v29 }
 0x33d   : > { %2038 = vmatprep.subr.mxu0 %v1687_v28  ;;  %2070 = vmatpush3.msra.mxu1 %v1705_v31 }
 0x33e   : > { %2039 = vmatpush3.msra.mxu0 %v1671_v30  ;;  %2071 = vmatprep.subr.mxu1 %v1720_v32 }
 0x33f   : > { %2040 = vmatprep.subr.mxu0 %v1686_v33  ;;  %2072 = vmatpush3.msra.mxu1 %v1704_v34 }
 0x340   : > { %2041 = vmatpush3.msra.mxu0 %v1670_v35  ;;  %2073 = vmatprep.subr.mxu1 %v1719_v36 }
 0x341   : > { %2042 = vmatprep.subr.mxu0 %v1685_v37  ;;  %2074 = vmatpush3.msra.mxu1 %v1703_v38 }
 0x342   : > { %2043 = vmatpush3.msra.mxu0 %v1669_v39  ;;  %2075 = vmatprep.subr.mxu1 %v1718_v40 }
 0x343   : > { %2044 = vmatprep.subr.mxu0 %v1684_v41  ;;  %2076 = vmatpush3.msra.mxu1 %v1702_v42 }
 0x344   : > { %2045 = vmatpush3.msra.mxu0 %v1668_v43  ;;  %2077 = vmatprep.subr.mxu1 %v1717_v44 }
 0x345   : > { %2046 = vmatprep.subr.mxu0 %v1683_v45  ;;  %2078 = vmatpush3.msra.mxu1 %v1701_v46 }
 0x346   : > { %2047 = vmatpush3.msra.mxu0 %v1667_v47  ;;  %2079 = vmatprep.subr.mxu1 %v1716_v48 }
 0x347   : > { %2048 = vmatprep.subr.mxu0 %v1682_v49  ;;  %2080 = vmatpush3.msra.mxu1 %v1700_v50 }
 0x348   : > { %2049 = vmatpush3.msra.mxu0 %v1666_v51  ;;  %2081 = vmatprep.subr.mxu1 %v1715_v52 }
 0x349   : > { %2050 = vmatprep.subr.mxu0 %v1681_v53  ;;  %2082 = vmatpush3.msra.mxu1 %v1699_v54 }
 0x34a   : > { %2051 = vmatpush3.msra.mxu0 %v1665_v55  ;;  %2083 = vmatprep.subr.mxu1 %v1714_v61  ;;  %v2010_v55 = vld [vmem:[%s2970_s16] ss:$0 sm:$0xff] }
 0x34b   : > { %2052 = vmatprep.subr.mxu0 %v1680_v56  ;;  %2084 = vmatpush3.msra.mxu1 %v1698_v63 }
 0x34c   : > { %2053 = vmatpush3.msra.mxu0 %v1664_v57  ;;  %2085 = vmatprep.subr.mxu1 %v1713_v1 }
 0x34d   : > { %2054 = vmatprep.subr.mxu0 %v1679_v58  ;;  %2086 = vmatpush3.msra.mxu1 %v1697_v3 }
 0x34e   : > { %2055 = vmatpush3.msra.mxu0 %v1663_v59  ;;  %2087 = vmatprep.subr.mxu1 %v1712_v5 }
 0x34f   : > { %2056 = vmatprep.subr.mxu0 %v1678_v60  ;;  %2088 = vmatpush3.msra.mxu1 %v1696_v8 }
 0x350   : > { %2057 = vmatpush3.msra.mxu0 %v1662_v62  ;;  %2089 = vmatprep.subr.mxu1 %v1711_v10 }
 0x351   : > { %2058 = vmatprep.subr.mxu0 %v1677_v0  ;;  %2090 = vmatpush3.msra.mxu1 %v1695_v12 }
 0x352   : > { %2059 = vmatpush3.msra.mxu0 %v1661_v2  ;;  %2091 = vmatprep.subr.mxu1 %v1710_v13 }
 0x353   : > { %2060 = vmatprep.subr.mxu0 %v1676_v4  ;;  %2092 = vmatpush3.msra.mxu1 %v1694_v14 }
 0x354   : > { %2061 = vmatpush3.msra.mxu0 %v1660_v6  ;;  %2093 = vmatprep.subr.mxu1 %v1709_v15 }
 0x355   : > { %2062 = vmatprep.subr.mxu0 %v1675_v9  ;;  %2094 = vmatpush3.msra.mxu1 %v1693_v16 }
 0x356   : > { %2063 = vmatpush3.msra.mxu0 %v1659_v11  ;;  %2095 = vmatprep.subr.mxu1 %v1708_v17 }
 0x357   : > { %2096 = vmatpush3.msra.mxu1 %v1692_v18 }
 0x358   : > { %2097 = vmatprep.subr.mxu1 %v1707_v19 }
 0x359   : > { %2098 = vmatpush3.msra.mxu1 %v1691_v20 }
 0x3b8   : > { %v1095_v22 = vpop.xlane.xlu1 %1094 }
 0x3bc   : > { %v1255_v21 = vpop.xlane.xlu0 %1254 }
 0x3bd   : > { %2224 = vrcp.f32 %v1255_v21 }
 0x3be   : > { %2226 = vrcp.f32 %v1095_v22 }
 0x3c0   : > { %v1415_v7 = vpop.xlane.xlu1 %1414 }
 0x3c4   : > { %v1575_v23 = vpop.xlane.xlu0 %1574 }
 0x3c5   : > { %2228 = vrcp.f32 %v1575_v23 }
 0x3c6   : > { %2230 = vrcp.f32 %v1415_v7 }
 0x3ca   : > { %v2225_v24 = vpop.eup %2224 }
 0x3cb   : > { %v2227_v25 = vpop.eup %2226  ;;  %v1330_v26 = vmul.f32 %v2225_v24, %v1255_v21 }
 0x3cc   : > { %v1170_v27 = vmul.f32 %v2227_v25, %v1095_v22 }
 0x3cd   : > { %v1331_v28 = vsub.f32 2.0, %v1330_v26 }
 0x3ce   : > { %v1171_v30 = vsub.f32 2.0, %v1170_v27 }
 0x3cf   : > { %v1332_v35 = vmul.f32 %v2225_v24, %v1331_v28 }
 0x3d0   : > { %v1172_v37 = vmul.f32 %v2227_v25, %v1171_v30 }
 0x3d2   : > { %v2229_v29 = vpop.eup %2228 }
 0x3d3   : > { %v2231_v32 = vpop.eup %2230  ;;  %v1650_v34 = vmul.f32 %v2229_v29, %v1575_v23 }
 0x3d4   : > { %v1490_v36 = vmul.f32 %v2231_v32, %v1415_v7 }
 0x3d5   : > { %v1651_v42 = vsub.f32 2.0, %v1650_v34 }
 0x3d6   : > { %v1491_v43 = vsub.f32 2.0, %v1490_v36 }
 0x3d7   : > { %v1652_v46 = vmul.f32 %v2229_v29, %v1651_v42 }
 0x3d8   : > { %v1492_v47 = vmul.f32 %v2231_v32, %v1491_v43 }
 0x3ee   : > { %v1165_v31 = vpop.f32.mrf.mxu1 }
 0x3ef   : > { %v1173_v40 = vmul.f32 %v1172_v37, %v1165_v31 }
 0x3f0   : > { %v2111_v33 = vpop.f32.mrf.mxu1 }
 0x3f2   : > { %v1325_v38 = vpop.f32.mrf.mxu1 }
 0x3f3   : > { %v1333_v39 = vmul.f32 %v1332_v35, %v1325_v38 }
 0x3f4   : > { %v2121_v41 = vpop.f32.mrf.mxu1 }
 0x3f5   : > { %1794 = vmatprep.mubr.f32.mxu0 %v1333_v39 }
 0x3f6   : > { %v1485_v44 = vpop.f32.mrf.mxu1  ;;  %1795 = vmatmul.mubr.f32.vlgmr.msra.gmra.mxu0 %v1173_v40 }
 0x3f7   : > { %v1493_v50 = vmul.f32 %v1492_v47, %v1485_v44 }
 0x3f8   : > { %v2131_v45 = vpop.f32.mrf.mxu1 }
 0x3fa   : > { %v1645_v48 = vpop.f32.mrf.mxu1 }
 0x3fb   : > { %v1653_v49 = vmul.f32 %v1652_v46, %v1645_v48 }
 0x3fc   : > { %v2141_v51 = vpop.f32.mrf.mxu1 }
 0x3fd   : > { %1864 = vmatprep.mubr.f32.mxu1 %v1653_v49 }
 0x3fe   : > { %1865 = vmatmul.mubr.f32.vlgmr.msra.gmra.mxu1 %v1493_v50 }
 0x4b6   : > { %v2064_v52 = vpop.f32.mrf.mxu0 }
 0x4b8   : > { %v2065_v53 = vpop.f32.mrf.mxu0 }
 0x4b9   : > { %v2066_v54 = vadd.f32 %v2065_v53, %v2064_v52 }
 0x4bb   : > { %v1797_v58 = vadd.f32 %v2066_v54, %v2010_v55 }
 0x4be   : > { %v2099_v56 = vpop.f32.mrf.mxu1 }
 0x4c0   : > { %v2100_v57 = vpop.f32.mrf.mxu1 }
 0x4c1   : > { %v2101_v59 = vadd.f32 %v2100_v57, %v2099_v56 }
 0x4c3   : > { %v1867_v60 = vadd.f32 %v2101_v59, %v1797_v58 }
 0x4c5   : > { %1870 = vst.msk [vmem:[%s427_s10] sm:$0xff] %vm864_vm1, %v1867_v60 }
 0x4c6   : > { %2245 = shalt.err (!%p2242_p9)
}
 0x4c7   : > { %s2246_s27 = scalar_lea.hbm %s1885_s28, 128  ;;  %s2250_s19 = scalar_lea.hbm %s2971_s14, 512 }
 0x4c8   : > { %p2247_p10 = scmp.ne.s32.totalorder %s1885_s28, %s2246_s27  ;;  %p2251_p13 = scmp.lt.s32.totalorder %s1885_s28, %s2971_s14 }
 0x4c9   : > { %p2252_p0 = scmp.lt.s32.totalorder %s2250_s19, %s2246_s27 }
 0x4ca   : > { %p2248_p11 = pnand %p2247_p10, %p2441_p3 }
 0x4cb   : > { %p2253_p1 = por %p2252_p0, %p2251_p13 }
 0x4cc   : > { %p2249_p12 = pneg %p2248_p11 }
 0x4ce   : > { %p2254_p2 = pnand %p2253_p1, %p2249_p12 }
 0x4d0   : > { %2257 = shalt.err (!%p2254_p2)
}
 0x4d1   : > { %2142 = dma.vmem_to_hbm [thread:$0]  (%p2441_p3), %s1888_s25, 128, %s1885_s28, %s1872_s21  }
 0x4d2 PF: > { %s2973_s16 = sld [smem:[#allocation12_spill]] }
 0x4d3   : > { %s2974_s11 = sld [smem:[#allocation8_spill]] }
 0x4d8   : > { %p2148_p4 = scmp.ge.s32.totalorder %s2973_s16, 2 }
 0x4d9   : > { %s1899_s15 = sand.u32 1, %s2974_s11  }
 0x4da   : > { %p2145_p5 = pnand %p2148_p4, %p2450_p8  ;;  %s1900_s20 = scalar_lea.sflag [#allocation6], %s1899_s15 }
 0x4dc   : > { %p2146_p6 = pneg %p2145_p5 }
 0x4de   : > { %2291 = dma.done.wait (%p2146_p6), %s1900_s20, 128  }
 0x4df   : > { %2293 = vsyncadd (%p2146_p6), %s1900_s20, 4294967168  ;;  %s24_s24 = sadd.s32 1, %s2973_s16   ;;  %s2976_s29 = sld [smem:[#allocation9_spill]] }
 0x4e0   : > { %p21_p7 = scmp.ge.s32.totalorder %s24_s24, 6   ;;  %s2977_s19 = sld [smem:[#allocation16_spill]] }
 0x4e1   : > { %s2978_s20 = sld [smem:[#allocation10_spill]]  ;;  %s2982_s17 = smov %s2300_s18 }
 0x4e2   : > { %s2979_s21 = sld [smem:[#allocation11_spill]]  ;;  %23 = sbr.rel (!%p21_p7) target bundleno = 8 (0x8), region = 109 }
 0x4e3   : > { %s2980_s22 = sld [smem:[#allocation13_spill]] }
 0x4e4   : > { %s2981_s23 = sld [smem:[#allocation14_spill]] }
 0x4e5   : > { %s2983_s18 = smov %s2976_s29 }
 0x4e7   :  { %1905 = vsyncpa [#allocation6], 1 }
 0x4e8   :  { %1907 = vsyncpa [#allocation6 + $0x1], 1 }

</bundles_post_ra>
